<compile_context>
chip_gen: v6e
topology: v6e:2x2x1
jax: 0.10.0
libtpu: 0.0.40
codegen_flags: <defaults>
</compile_context>

<pallas_src>
import functools

import jax
import jax.numpy as jnp
import numpy as np
from jax.experimental import pallas as pl
from jax.experimental.pallas import tpu as pltpu


def _self_attn2_kernel(x_ref, wq_ref, bq_ref, wv_ref, bv_ref, wc_ref,
                       wo_ref, bo_ref, o_ref, *, group_num, centr_num, scale):
    """One grid step = one batch element, channel-major layout.

    x_ref  : (1, C, N)   channels x tokens (N = H*W), matmul dtype (bf16/f32)
    wq_ref : (C4, C)     query_conv weight   (matmul dtype)
    bq_ref : (C4, 1)     f32
    wv_ref : (C, C)      value_conv weight   (matmul dtype)
    bv_ref : (C, 1)      f32
    wc_ref : (M*G, C4)   L2-normalized centroid weight (matmul dtype)
    wo_ref : (C, C)      out_conv weight     (matmul dtype)
    bo_ref : (C, 1)      f32
    o_ref  : (1, C, N)   f32
    """
    x = x_ref[0]                                   # (C, N)
    C, N = x.shape
    M, G = centr_num, group_num
    Cg = C // G
    mm = x.dtype                                   # MXU operand dtype

    # 1x1 convs as (K, C) @ (C, N) MXU matmuls with f32 accumulation.
    q = jnp.dot(wq_ref[...], x, preferred_element_type=jnp.float32) + bq_ref[...]
    v = jnp.dot(wv_ref[...], x, preferred_element_type=jnp.float32) + bv_ref[...]

    # F.normalize(Q, dim=1): unit L2 norm over channels (f32, rsqrt on EUP).
    qn = q * jax.lax.rsqrt(
        jnp.maximum(jnp.sum(q * q, axis=0, keepdims=True), 1e-24))

    # Centroid logits: (M*G, N) -> (G, M, N).
    logits = (jnp.dot(wc_ref[...], qn.astype(mm),
                      preferred_element_type=jnp.float32) * scale)
    logits = logits.reshape(G, M, N)

    # Shared exp for both softmaxes: |logit| <= scale because Q and the
    # centroid filters are unit-normalized, so f32 exp cannot overflow and
    # the per-axis max subtraction can be skipped (halves EUP exp traffic).
    e = jnp.exp(logits)
    cs = e * pl.reciprocal(jnp.sum(e, axis=1, keepdims=True), approx=True)   # softmax over centroids (torch dim=1)
    asf = e * pl.reciprocal(jnp.sum(e, axis=2, keepdims=True), approx=True)  # softmax over positions (torch dim=2)

    # Batched per-group attention: G is a batch dim -> no loop / concatenate.
    vg = v.reshape(G, Cg, N).astype(mm)                         # (G, Cg, N)
    o1 = jnp.einsum('gcn,gmn->gcm', vg, asf.astype(mm),
                    preferred_element_type=jnp.float32)         # (G, Cg, M)
    og = jnp.einsum('gcm,gmn->gcn', o1.astype(mm), cs.astype(mm),
                    preferred_element_type=jnp.float32)         # (G, Cg, N)
    o_full = og.reshape(C, N).astype(mm)                        # group-major channels

    o_ref[0] = (jnp.dot(wo_ref[...], o_full, preferred_element_type=jnp.float32)
                + bo_ref[...]).astype(o_ref.dtype)


def _full_spec(arr):
    zeros = (0,) * arr.ndim
    return pl.BlockSpec(arr.shape, lambda b: zeros)


def self_attn2_pallas(x_nchw, params, *, centr_num, group_num, scale=14.0,
                      matmul_dtype=jnp.bfloat16):
    """x_nchw: (B, C, H, W) float32. Returns (B, C, H, W) float32."""
    wq, bq, wv, bv, wc, wo, bo = (params[k] for k in
                                  ("wq", "bq", "wv", "bv", "wc", "wo", "bo"))
    B, C, H, W = x_nchw.shape
    N = H * W
    C4 = C // 4
    MG = centr_num * group_num

    # NCHW -> (B, C, N): pure reshape, no transpose. Cast to the MXU dtype.
    x_bcn = x_nchw.reshape(B, C, N).astype(matmul_dtype)

    # F.normalize(W, dim=1): unit-norm each (C4,) centroid filter (f32), then
    # cast for the MXU.
    wc2 = wc.reshape(MG, C4)
    wc_n = wc2 * jax.lax.rsqrt(
        jnp.maximum(jnp.sum(wc2 * wc2, axis=1, keepdims=True), 1e-24))

    # 1x1-conv weights kept in their natural (out, in) orientation: in the
    # channel-major layout the kernel computes W @ X, so no transposes at all.
    wq_m = wq.reshape(C4, C).astype(matmul_dtype)
    wv_m = wv.reshape(C, C).astype(matmul_dtype)
    wo_m = wo.reshape(C, C).astype(matmul_dtype)
    wc_m = wc_n.astype(matmul_dtype)
    bq_r = bq.reshape(C4, 1).astype(jnp.float32)
    bv_r = bv.reshape(C, 1).astype(jnp.float32)
    bo_r = bo.reshape(C, 1).astype(jnp.float32)

    kernel = functools.partial(_self_attn2_kernel,
                               group_num=group_num,
                               centr_num=centr_num,
                               scale=scale)

    # Explicit VMEM budget: double-buffered x/out blocks + resident weights +
    # f32 intermediates, floored at 32 MiB and capped at v7x's 64 MiB.
    itemsize = jnp.dtype(matmul_dtype).itemsize
    weight_bytes = ((wq_m.size + wv_m.size + wo_m.size + wc_m.size) * itemsize
                    + (bq_r.size + bv_r.size + bo_r.size) * 4)
    block_bytes = C * N * itemsize + C * N * 4
    scratch_bytes = 10 * C * N * 4
    vmem_limit = int(min(64 * 1024 * 1024,
                         max(32 * 1024 * 1024,
                             2 * weight_bytes + 2 * block_bytes + scratch_bytes)))

    out_bcn = pl.pallas_call(
        kernel,
        out_shape=jax.ShapeDtypeStruct((B, C, N), jnp.float32),
        grid_spec=pltpu.PrefetchScalarGridSpec(
            num_scalar_prefetch=0,
            grid=(B,),
            in_specs=[
                pl.BlockSpec((1, C, N), lambda b: (b, 0, 0)),   # x
                _full_spec(wq_m), _full_spec(bq_r),
                _full_spec(wv_m), _full_spec(bv_r),
                _full_spec(wc_m),
                _full_spec(wo_m), _full_spec(bo_r),
            ],
            out_specs=pl.BlockSpec((1, C, N), lambda b: (b, 0, 0)),
        ),
        compiler_params=pltpu.CompilerParams(
            dimension_semantics=("parallel",),
            vmem_limit_bytes=vmem_limit),
    )(x_bcn, wq_m, bq_r, wv_m, bv_r, wc_m, wo_m, bo_r)

    # (B, C, N) -> NCHW: pure reshape, no transpose.
    return out_bcn.reshape(B, C, H, W)


def self_attn2_reference(x, params, *, centr_num, group_num, scale=14.0):
    """Pure-JAX f32 reference mirroring the PyTorch forward exactly (NCHW)."""
    wq, bq, wv, bv, wc, wo, bo = (params[k] for k in
                                  ("wq", "bq", "wv", "bv", "wc", "wo", "bo"))
    b, c, h, w = x.shape
    g, m = group_num, centr_num
    N = h * w
    c4 = c // 4
    xr = x.reshape(b, c, N)

    V = jnp.einsum('oc,bcn->bon', wv.reshape(c, c), xr) + bv[None, :, None]
    Q = jnp.einsum('oc,bcn->bon', wq.reshape(c4, c), xr) + bq[None, :, None]
    Qn = Q / jnp.maximum(jnp.linalg.norm(Q, axis=1, keepdims=True), 1e-12)
    W2 = wc.reshape(m * g, c4)
    Wn = W2 / jnp.maximum(jnp.linalg.norm(W2, axis=1, keepdims=True), 1e-12)
    M = jnp.einsum('kc,bcn->bkn', Wn, Qn) * scale          # (b, m*g, N)
    M = M.reshape(b * g, m, N)
    Csoft = jax.nn.softmax(M, axis=1)
    A = jax.nn.softmax(M, axis=2)
    Vg = V.reshape(b * g, c // g, N)
    O = jnp.einsum('bcn,bmn->bcm', Vg, A)
    O = jnp.einsum('bcm,bmn->bcn', O, Csoft)
    O = O.reshape(b, c, N)
    out = jnp.einsum('oc,bcn->bon', wo.reshape(c, c), O) + bo[None, :, None]
    return out.reshape(b, c, h, w)


def make_params(key, in_dim, centr_num, group_num):
    c, c4 = in_dim, in_dim // 4
    ks = jax.random.split(key, 7)
    params = dict(
        wq=0.1 * jax.random.normal(ks[0], (c4, c, 1, 1), jnp.float32),
        bq=0.1 * jax.random.normal(ks[1], (c4,), jnp.float32),
        wv=0.1 * jax.random.normal(ks[2], (c, c, 1, 1), jnp.float32),
        bv=0.1 * jax.random.normal(ks[3], (c,), jnp.float32),
        wo=0.1 * jax.random.normal(ks[4], (c, c, 1, 1), jnp.float32),
        bo=0.1 * jax.random.normal(ks[5], (c,), jnp.float32),
        # nn.init.orthogonal_ equivalent, shape (m*g, c4, 1, 1)
        wc=jax.nn.initializers.orthogonal()(
            ks[6], (centr_num * group_num, c4)).reshape(
                centr_num * group_num, c4, 1, 1).astype(jnp.float32),
    )
    return params


if __name__ == "__main__":
    # N = H*W = 128 keeps the token (lane) axis dense; C=64 -> C4=16, Cg=32.
    B, C, H, W = 2, 64, 8, 16
    CENTR_NUM, GROUP_NUM = 8, 2

    key = jax.random.PRNGKey(0)
    kx, kp = jax.random.split(key)
    x = jax.random.normal(kx, (B, C, H, W), jnp.float32)
    params = make_params(kp, C, CENTR_NUM, GROUP_NUM)

    ref = self_attn2_reference(x, params, centr_num=CENTR_NUM,
                               group_num=GROUP_NUM)
    ref_np = np.asarray(ref, dtype=np.float64)

    # f32-operand path: tight structural check (only the approx reciprocal and
    # op-ordering differ from the reference math).
    out_f32 = jax.block_until_ready(
        self_attn2_pallas(x, params, centr_num=CENTR_NUM, group_num=GROUP_NUM,
                          matmul_dtype=jnp.float32))
    np.testing.assert_allclose(np.asarray(out_f32), np.asarray(ref),
                               rtol=1e-2, atol=1e-2)

    # bf16-operand path (default / fast): check global relative error.
    out_bf16 = jax.block_until_ready(
        self_attn2_pallas(x, params, centr_num=CENTR_NUM, group_num=GROUP_NUM,
                          matmul_dtype=jnp.bfloat16))
    diff = np.asarray(out_bf16, dtype=np.float64) - ref_np
    rel = np.linalg.norm(diff) / np.linalg.norm(ref_np)
    assert rel < 5e-2, f"bf16 path relative error too large: {rel}"

    print("KERNEL_OK")
</pallas_src>

<mosaic_0001>
module attributes {stable_mosaic.version = 11 : i64} {
  func.func @_self_attn2_kernel(%arg0: i32, %arg1: memref<1x64x128xf32, #tpu.memory_space<vmem>>, %arg2: memref<16x64xf32, #tpu.memory_space<vmem>>, %arg3: memref<16x1xf32, #tpu.memory_space<vmem>>, %arg4: memref<64x64xf32, #tpu.memory_space<vmem>>, %arg5: memref<64x1xf32, #tpu.memory_space<vmem>>, %arg6: memref<16x16xf32, #tpu.memory_space<vmem>>, %arg7: memref<64x64xf32, #tpu.memory_space<vmem>>, %arg8: memref<64x1xf32, #tpu.memory_space<vmem>>, %arg9: memref<1x64x128xf32, #tpu.memory_space<vmem>>) attributes {dimension_semantics = [#tpu.dimension_semantics<parallel>], iteration_bounds = array<i64: 2>, scalar_prefetch = 0 : i64, scratch_operands = 0 : i64, tpu.core_type = #tpu.core_type<tc>, window_params = [{transform_indices = @transform_0, window_bounds = array<i64: 1, 64, 128>}, {pipeline_mode = #tpu.pipeline_mode<synchronous>, transform_indices = @transform_1, window_bounds = array<i64: 16, 64>}, {pipeline_mode = #tpu.pipeline_mode<synchronous>, transform_indices = @transform_2, window_bounds = array<i64: 16, 1>}, {pipeline_mode = #tpu.pipeline_mode<synchronous>, transform_indices = @transform_3, window_bounds = array<i64: 64, 64>}, {pipeline_mode = #tpu.pipeline_mode<synchronous>, transform_indices = @transform_4, window_bounds = array<i64: 64, 1>}, {pipeline_mode = #tpu.pipeline_mode<synchronous>, transform_indices = @transform_5, window_bounds = array<i64: 16, 16>}, {pipeline_mode = #tpu.pipeline_mode<synchronous>, transform_indices = @transform_6, window_bounds = array<i64: 64, 64>}, {pipeline_mode = #tpu.pipeline_mode<synchronous>, transform_indices = @transform_7, window_bounds = array<i64: 64, 1>}, {transform_indices = @transform_8, window_bounds = array<i64: 1, 64, 128>}]} {
    %c0 = arith.constant 0 : index
    %c0_0 = arith.constant 0 : index
    %c0_1 = arith.constant 0 : index
    %0 = vector.load %arg1[%c0, %c0_0, %c0_1] : memref<1x64x128xf32, #tpu.memory_space<vmem>>, vector<1x64x128xf32>
    %1 = vector.shape_cast %0 : vector<1x64x128xf32> to vector<64x128xf32>
    %c0_2 = arith.constant 0 : index
    %c0_3 = arith.constant 0 : index
    %2 = vector.load %arg2[%c0_2, %c0_3] : memref<16x64xf32, #tpu.memory_space<vmem>>, vector<16x64xf32>
    %cst = arith.constant dense<0.000000e+00> : vector<16x128xf32>
    %3 = tpu.matmul %2, %1, %cst {dimension_numbers = #tpu.dot_dimension_numbers<[1], [0], [0], [1], [0, 0, 1, 1], [], []>} : vector<16x64xf32>, vector<64x128xf32>, vector<16x128xf32> -> vector<16x128xf32>
    %c0_4 = arith.constant 0 : index
    %c0_5 = arith.constant 0 : index
    %4 = vector.load %arg3[%c0_4, %c0_5] : memref<16x1xf32, #tpu.memory_space<vmem>>, vector<16x1xf32>
    %5 = vector.broadcast %4 : vector<16x1xf32> to vector<16x128xf32>
    %6 = arith.addf %3, %5 : vector<16x128xf32>
    %c0_6 = arith.constant 0 : index
    %c0_7 = arith.constant 0 : index
    %7 = vector.load %arg4[%c0_6, %c0_7] : memref<64x64xf32, #tpu.memory_space<vmem>>, vector<64x64xf32>
    %cst_8 = arith.constant dense<0.000000e+00> : vector<64x128xf32>
    %8 = tpu.matmul %7, %1, %cst_8 {dimension_numbers = #tpu.dot_dimension_numbers<[1], [0], [0], [1], [0, 0, 1, 1], [], []>} : vector<64x64xf32>, vector<64x128xf32>, vector<64x128xf32> -> vector<64x128xf32>
    %c0_9 = arith.constant 0 : index
    %c0_10 = arith.constant 0 : index
    %9 = vector.load %arg5[%c0_9, %c0_10] : memref<64x1xf32, #tpu.memory_space<vmem>>, vector<64x1xf32>
    %10 = vector.broadcast %9 : vector<64x1xf32> to vector<64x128xf32>
    %11 = arith.addf %8, %10 : vector<64x128xf32>
    %12 = arith.mulf %6, %6 : vector<16x128xf32>
    %cst_11 = arith.constant dense<0.000000e+00> : vector<128xf32>
    %13 = vector.multi_reduction <add>, %12, %cst_11 [0] : vector<16x128xf32> to vector<128xf32>
    %14 = vector.shape_cast %13 : vector<128xf32> to vector<1x128xf32>
    %cst_12 = arith.constant 1.000000e-24 : f32
    %15 = vector.broadcast %cst_12 : f32 to vector<1x128xf32>
    %16 = arith.maximumf %14, %15 : vector<1x128xf32>
    %17 = math.rsqrt %16 : vector<1x128xf32>
    %18 = vector.broadcast %17 : vector<1x128xf32> to vector<16x128xf32>
    %19 = arith.mulf %6, %18 : vector<16x128xf32>
    %c0_13 = arith.constant 0 : index
    %c0_14 = arith.constant 0 : index
    %20 = vector.load %arg6[%c0_13, %c0_14] : memref<16x16xf32, #tpu.memory_space<vmem>>, vector<16x16xf32>
    %cst_15 = arith.constant dense<0.000000e+00> : vector<16x128xf32>
    %21 = tpu.matmul %20, %19, %cst_15 {dimension_numbers = #tpu.dot_dimension_numbers<[1], [0], [0], [1], [0, 0, 1, 1], [], []>} : vector<16x16xf32>, vector<16x128xf32>, vector<16x128xf32> -> vector<16x128xf32>
    %cst_16 = arith.constant 1.400000e+01 : f32
    %22 = vector.broadcast %cst_16 : f32 to vector<16x128xf32>
    %23 = arith.mulf %21, %22 : vector<16x128xf32>
    %24 = vector.shape_cast %23 : vector<16x128xf32> to vector<2x8x128xf32>
    %25 = math.exp %24 : vector<2x8x128xf32>
    %cst_17 = arith.constant dense<0.000000e+00> : vector<2x128xf32>
    %26 = vector.multi_reduction <add>, %25, %cst_17 [1] : vector<2x8x128xf32> to vector<2x128xf32>
    %27 = vector.shape_cast %26 : vector<2x128xf32> to vector<2x1x128xf32>
    %28 = tpu.reciprocal %27 {approx = true} : vector<2x1x128xf32> -> vector<2x1x128xf32>
    %29 = vector.broadcast %28 : vector<2x1x128xf32> to vector<2x8x128xf32>
    %30 = arith.mulf %25, %29 : vector<2x8x128xf32>
    %cst_18 = arith.constant dense<0.000000e+00> : vector<2x8xf32>
    %31 = vector.multi_reduction <add>, %25, %cst_18 [2] : vector<2x8x128xf32> to vector<2x8xf32>
    %32 = vector.shape_cast %31 : vector<2x8xf32> to vector<2x8x1xf32>
    %33 = tpu.reciprocal %32 {approx = true} : vector<2x8x1xf32> -> vector<2x8x1xf32>
    %34 = vector.broadcast %33 : vector<2x8x1xf32> to vector<2x8x128xf32>
    %35 = arith.mulf %25, %34 : vector<2x8x128xf32>
    %36 = vector.shape_cast %11 : vector<64x128xf32> to vector<2x32x128xf32>
    "tpu.trace_start"() <{level = 10 : i32, message = "gcn,gmn->gcm"}> : () -> ()
    %cst_19 = arith.constant dense<0.000000e+00> : vector<2x32x8xf32>
    %37 = tpu.matmul %36, %35, %cst_19 {dimension_numbers = #tpu.dot_dimension_numbers<[2], [2], [1], [1], [0, 0, 0, 1, 1, 1], [0], [0]>} : vector<2x32x128xf32>, vector<2x8x128xf32>, vector<2x32x8xf32> -> vector<2x32x8xf32>
    "tpu.trace_stop"() : () -> ()
    "tpu.trace_start"() <{level = 10 : i32, message = "gcm,gmn->gcn"}> : () -> ()
    %cst_20 = arith.constant dense<0.000000e+00> : vector<2x32x128xf32>
    %38 = tpu.matmul %37, %30, %cst_20 {dimension_numbers = #tpu.dot_dimension_numbers<[2], [1], [1], [2], [0, 0, 0, 1, 1, 2], [0], [0]>} : vector<2x32x8xf32>, vector<2x8x128xf32>, vector<2x32x128xf32> -> vector<2x32x128xf32>
    "tpu.trace_stop"() : () -> ()
    %39 = vector.shape_cast %38 : vector<2x32x128xf32> to vector<64x128xf32>
    %c0_21 = arith.constant 0 : index
    %c0_22 = arith.constant 0 : index
    %40 = vector.load %arg7[%c0_21, %c0_22] : memref<64x64xf32, #tpu.memory_space<vmem>>, vector<64x64xf32>
    %cst_23 = arith.constant dense<0.000000e+00> : vector<64x128xf32>
    %41 = tpu.matmul %40, %39, %cst_23 {dimension_numbers = #tpu.dot_dimension_numbers<[1], [0], [0], [1], [0, 0, 1, 1], [], []>} : vector<64x64xf32>, vector<64x128xf32>, vector<64x128xf32> -> vector<64x128xf32>
    %c0_24 = arith.constant 0 : index
    %c0_25 = arith.constant 0 : index
    %42 = vector.load %arg8[%c0_24, %c0_25] : memref<64x1xf32, #tpu.memory_space<vmem>>, vector<64x1xf32>
    %43 = vector.broadcast %42 : vector<64x1xf32> to vector<64x128xf32>
    %44 = arith.addf %41, %43 : vector<64x128xf32>
    %c0_26 = arith.constant 0 : index
    %c0_27 = arith.constant 0 : index
    %c0_28 = arith.constant 0 : index
    %45 = vector.load %arg9[%c0_26, %c0_27, %c0_28] : memref<1x64x128xf32, #tpu.memory_space<vmem>>, vector<1x64x128xf32>
    %46 = vector.shape_cast %45 : vector<1x64x128xf32> to vector<64x128xf32>
    %47 = vector.shape_cast %44 : vector<64x128xf32> to vector<1x64x128xf32>
    tpu.vector_store %arg9[%c0_26, %c0_27, %c0_28], %47 {strides = array<i32>} : memref<1x64x128xf32, #tpu.memory_space<vmem>>, vector<1x64x128xf32>,
    return
  }
  func.func @transform_0(%arg0: i32) -> (i32, i32, i32) {
    %c0_i32 = arith.constant 0 : i32
    %c0_i32_0 = arith.constant 0 : i32
    %c0_i32_1 = arith.constant 0 : i32
    return %arg0, %c0_i32, %c0_i32_0 : i32, i32, i32
  }
  func.func @transform_1(%arg0: i32) -> (i32, i32) {
    %c0_i32 = arith.constant 0 : i32
    %c0_i32_0 = arith.constant 0 : i32
    %c0_i32_1 = arith.constant 0 : i32
    return %c0_i32, %c0_i32_0 : i32, i32
  }
  func.func @transform_2(%arg0: i32) -> (i32, i32) {
    %c0_i32 = arith.constant 0 : i32
    %c0_i32_0 = arith.constant 0 : i32
    %c0_i32_1 = arith.constant 0 : i32
    return %c0_i32, %c0_i32_0 : i32, i32
  }
  func.func @transform_3(%arg0: i32) -> (i32, i32) {
    %c0_i32 = arith.constant 0 : i32
    %c0_i32_0 = arith.constant 0 : i32
    %c0_i32_1 = arith.constant 0 : i32
    return %c0_i32, %c0_i32_0 : i32, i32
  }
  func.func @transform_4(%arg0: i32) -> (i32, i32) {
    %c0_i32 = arith.constant 0 : i32
    %c0_i32_0 = arith.constant 0 : i32
    %c0_i32_1 = arith.constant 0 : i32
    return %c0_i32, %c0_i32_0 : i32, i32
  }
  func.func @transform_5(%arg0: i32) -> (i32, i32) {
    %c0_i32 = arith.constant 0 : i32
    %c0_i32_0 = arith.constant 0 : i32
    %c0_i32_1 = arith.constant 0 : i32
    return %c0_i32, %c0_i32_0 : i32, i32
  }
  func.func @transform_6(%arg0: i32) -> (i32, i32) {
    %c0_i32 = arith.constant 0 : i32
    %c0_i32_0 = arith.constant 0 : i32
    %c0_i32_1 = arith.constant 0 : i32
    return %c0_i32, %c0_i32_0 : i32, i32
  }
  func.func @transform_7(%arg0: i32) -> (i32, i32) {
    %c0_i32 = arith.constant 0 : i32
    %c0_i32_0 = arith.constant 0 : i32
    %c0_i32_1 = arith.constant 0 : i32
    return %c0_i32, %c0_i32_0 : i32, i32
  }
  func.func @transform_8(%arg0: i32) -> (i32, i32, i32) {
    %c0_i32 = arith.constant 0 : i32
    %c0_i32_0 = arith.constant 0 : i32
    %c0_i32_1 = arith.constant 0 : i32
    return %arg0, %c0_i32, %c0_i32_0 : i32, i32, i32
  }
}

</mosaic_0001>

<bundles_post_ra>
// kernel: tpu_custom_call.1
= control target key start
LH: loop header
LB: loop body
LE: loop exit
PB: predicated region body
PF: predicated region fallthrough
CT: control target
= control target key end

     0   :  { %13 = vsyncpa [#allocation3], 0  ;;  %s2224_s0 = inlined_call_operand.vmem [shape: f32[2,64,128], index: 0, kind: input, shape index: {}]   ;;  %s2225_s1 = inlined_call_operand.vmem [shape: f32[16,64], index: 1, kind: input, shape index: {}]   ;;  %s2226_s2 = inlined_call_operand.vmem [shape: f32[16,1], index: 2, kind: input, shape index: {}]   ;;  %s2227_s3 = inlined_call_operand.hbm [shape: f32[64,64], index: 3, kind: input, shape index: {}]   ;;  %s2228_s4 = inlined_call_operand.vmem [shape: f32[64,1], index: 4, kind: input, shape index: {}]   ;;  %s2229_s5 = inlined_call_operand.hbm [shape: f32[16,16], index: 5, kind: input, shape index: {}]   ;;  %s2230_s6 = inlined_call_operand.hbm [shape: f32[64,64], index: 6, kind: input, shape index: {}]   ;;  %s2231_s7 = inlined_call_operand.vmem [shape: f32[64,1], index: 7, kind: input, shape index: {}]   ;;  %s2232_s8 = inlined_call_operand.hbm [shape: f32[2,64,128], index: 8, kind: output, shape index: {}]  }
   0x1   :  { %14 = vsyncpa [#allocation6], 0 }
   0x2   :  { %15 = vsyncpa [#allocation4], 0 }
   0x3   :  { %17 = vsyncpa [#allocation4 + $0x1], 0  ;;  %s1950_s27 = smov 0   ;;  %s1952_s28 = smov 0  }
   0x4   :  { %s1954_s29 = smov 0   ;;  %s1956_s30 = smov 0  }
   0x5 LB: > { %s1971_s9 = sadd.s32 4294967295, %s1894_s30   ;;  %s1429_s10 = sadd.s32 4294967294, %s1894_s30   ;;  %s1894_s30 = sphi %s1956_s30, %s2248_s30   ;;  %s1890_s29 = sphi %s1954_s29, %s2247_s29   ;;  %s1886_s28 = sphi %s1952_s28, %s2246_s28   ;;  %s1882_s27 = sphi %s1950_s27, %s2245_s27  }
   0x6   : > { %s1975_s11 = sadd.s32 1, %s1894_s30   ;;  %s203_s12 = sadd.s32 1, %s1890_s29 }
   0x7   : > { %s200_s13 = ssub.s32 %s1894_s30, %s1975_s11  ;;  %p213_p0 = scmp.ne.s32.totalorder %s1890_s29, %s1886_s28 }
   0x8   : > { %p201_p1 = scmp.eq.s32.totalorder %s200_s13, 0  ;;  %p214_p2 = scmp.eq.s32.totalorder %s1971_s9, 1 }
   0x9   : > { %p219_p3 = scmp.ne.s32.totalorder %s1886_s28, %s1882_s27  ;;  %p220_p4 = scmp.eq.s32.totalorder %s1429_s10, 1 }
   0xa   : > { %s1986_s14 = scalar_select %p201_p1, %s1890_s29, %s203_s12  }
   0xb   : > { %p1988_p5 = por %p214_p2, %p213_p0  ;;  %p1992_p6 = por %p220_p4, %p219_p3 }
   0xc   : > { %p1430_p7 = scmp.ge.s32.totalorder %s1894_s30, 1  ;;  %p227_p8 = scmp.lt.s32.totalorder %s1894_s30, 3 }
   0xd   : > { %s2235_s15 = scalar_select %p1988_p5, 1, 0 }
   0xe   : > { %s2236_s16 = scalar_select %p1992_p6, 1, 0 }
   0xf   : > { %p2233_p9 = scmp.eq.s32.totalorder %s1971_s9, 0  ;;  %p1999_p10 = pnand %p1430_p7, %p227_p8 }
  0x10   : > { %s1896_s18 = smov [#allocation5]   ;;  %s1897_s21 = smov [#allocation2]  }
  0x11   : > { %p1671_p11 = pneg %p1999_p10  ;;  %s261_s19 = sshll.u32 %s1896_s18, 4  ;;  %s262_s19 = int_to_ptr.vmem [resolvable:$true] %s261_s19 }
  0x12   : > { %s245_s22 = sshll.u32 %s1897_s21, 4  ;;  %s1898_s23 = smov [#allocation7]   ;;  %s246_s22 = int_to_ptr.vmem [resolvable:$true] %s245_s22 }
  0x13   : > { %p2007_p12 = pnand %p2233_p9, %p1671_p11  ;;  %s274_s24 = sshll.u32 %s1898_s23, 4  ;;  %s275_s24 = int_to_ptr.vmem [resolvable:$true] %s274_s24 }
  0x14   : > { %s1759_s25 = scalar_lea.vmem %s262_s19, 256  ;;  %p1767_p3 = scmp.lt.s32.totalorder %s262_s19, %s262_s19 }
  0x15   : > { %p1750_p13 = pneg %p2007_p12  ;;  %p1760_p0 = scmp.ne.s32.totalorder %s262_s19, %s1759_s25 }
  0x16   : > { %p1768_p4 = scmp.lt.s32.totalorder %s1759_s25, %s1759_s25 }
  0x17   : > { %p1762_p1 = pnand %p1760_p0, %p1750_p13 }
  0x18   : > { %p1769_p7 = por %p1768_p4, %p1767_p3 }
  0x19   : > { %p1763_p2 = pneg %p1762_p1 }
  0x1b   : > { %p1770_p8 = pnand %p1769_p7, %p1763_p2 }
  0x1d   : > { %1773 = shalt.err (!%p1770_p8)
}
  0x1e   : > { %s1899_s26 = smov 128   ;;  %s1900_s10 = smov 8  }
  0x1f   : > { %1677 = dma.hbm_to_vmem [thread:$0]  (!%p2007_p12), %s2229_s5, 256, %s262_s19, [#allocation6], %s1899_s26, %s1899_s26, %s1900_s10  }
  0x20   : > { %s1785_s18 = scalar_lea.vmem %s246_s22, 1024  ;;  %p1793_p9 = scmp.lt.s32.totalorder %s246_s22, %s246_s22 }
  0x21   : > { %p1786_p11 = scmp.ne.s32.totalorder %s246_s22, %s1785_s18  ;;  %p1794_p6 = scmp.lt.s32.totalorder %s1785_s18, %s1785_s18 }
  0x23   : > { %p1788_p0 = pnand %p1786_p11, %p1750_p13  ;;  %p1795_p3 = por %p1794_p6, %p1793_p9 }
  0x25   : > { %p1789_p1 = pneg %p1788_p0 }
  0x27   : > { %p1796_p2 = pnand %p1795_p3, %p1789_p1 }
  0x29   : > { %1799 = shalt.err (!%p1796_p2)
}
  0x2a   : > { %1674 = dma.hbm_to_vmem [thread:$0]  (!%p2007_p12), %s2227_s3, 1024, %s246_s22, [#allocation3], %s1899_s26, %s1899_s26, %s1900_s10  }
  0x2b   : > { %s1811_s19 = scalar_lea.vmem %s275_s24, 1024  ;;  %p1819_p11 = scmp.lt.s32.totalorder %s275_s24, %s275_s24 }
  0x2c   : > { %p1812_p4 = scmp.ne.s32.totalorder %s275_s24, %s1811_s19  ;;  %p1820_p0 = scmp.lt.s32.totalorder %s1811_s19, %s1811_s19 }
  0x2e   : > { %p1814_p7 = pnand %p1812_p4, %p1750_p13  ;;  %p1821_p5 = por %p1820_p0, %p1819_p11 }
  0x30   : > { %p1815_p8 = pneg %p1814_p7 }
  0x32   : > { %p1822_p6 = pnand %p1821_p5, %p1815_p8 }
  0x34   : > { %1825 = shalt.err (!%p1822_p6)
}
  0x35   : > { %1680 = dma.hbm_to_vmem [thread:$0]  (!%p2007_p12), %s2230_s6, 1024, %s275_s24, [#allocation6], %s1899_s26, %s1899_s26, %s1900_s10  }
  0x36   : > { %301 = sbr.rel (%p1999_p10) target bundleno = 1334 (0x536), region = 52  ;;  %p2239_p9 = scmp.eq.s32.totalorder (!%p1999_p10), %s1971_s9, 0 }
  0x3b   : > { %1869 = dma.done.wait (%p2239_p9), [#allocation3], 1024   ;;  %p2240_p13 = pmov %p2239_p9 }
  0x3c   : > { %p2241_p1 = pmov %p2239_p9 }
  0x3d   : > { %1871 = vsyncadd (%p2240_p13), [#allocation3], 4294966272 }
  0x3e   : > { %1873 = dma.done.wait (%p2241_p1), [#allocation6], 1280   ;;  %p2242_p5 = pmov %p2241_p1 }
  0x3f   : > { %p343_p3 = scmp.lt.s32.totalorder %s1971_s9, 1  ;;  %v1901_v0 = vmov 0   ;;  %v356_v9 = vld [vmem:[%s2225_s1] sm:$0xff]  ;;  %vm370_vm0 = vcmask 523264   ;;  %v357_v11 = vld [vmem:[%s2225_s1 + $0x8] sm:$0xff]  ;;  %v454_v13 = vld [vmem:[#allocation2 + $0x10] sm:$0xff] }
  0x40   : > { %1875 = vsyncadd (%p2242_p5), [#allocation6], 4294966016  ;;  %1732 = vset.pattern.permute.xlu0 %v1901_v0  ;;  %1733 = vset.pattern.permute.xlu1 %v1901_v0  ;;  %v452_v10 = vld [vmem:[#allocation2] sm:$0xff]  ;;  %v453_v12 = vld [vmem:[#allocation2 + $0x8] sm:$0xff]  ;;  %vm652_vm1 = vcmask 130048   ;;  %vm934_vm2 = vcmask 64512  }
  0x41   : > { %s344_s17 = scalar_select %p343_p3, %s1971_s9, 1  ;;  %1559 = vmatprep.mubr.msk.f32.mxu0 %vm370_vm0, %v356_v9  ;;  %v358_v14 = vld [vmem:[%s2226_s2] sm:$0xff]  ;;  %1578 = vmatprep.mubr.msk.f32.mxu1 %vm370_vm0, %v452_v10  ;;  %v455_v15 = vld [vmem:[#allocation2 + $0x18] sm:$0xff]  ;;  %v359_v17 = vld [vmem:[%s2226_s2 + $0x8] sm:$0xff] }
  0x42   : > { %362 = vperm.xlu0 %1732, %v358_v14   ;;  %v456_v16 = vld [vmem:[#allocation2 + $0x20] sm:$0xff]  ;;  %v457_v18 = vld [vmem:[#allocation2 + $0x28] sm:$0xff]  ;;  %v458_v19 = vld [vmem:[#allocation2 + $0x30] sm:$0xff]  ;;  %s340_s13 = sand.u32 1, %s1886_s28   ;;  %s1476_s19 = sshll.u32 %s1971_s9, 10 }
  0x43   : > { %s1475_s20 = sshll.u32 %s344_s17, 6  ;;  %v460_v20 = vld [vmem:[%s2228_s4] sm:$0xff]  ;;  %v459_v21 = vld [vmem:[#allocation2 + $0x38] sm:$0xff]  ;;  %v462_v22 = vld [vmem:[%s2228_s4 + $0x10] sm:$0xff]  ;;  %s1439_s18 = sshll.u32 %s340_s13, 6 }
  0x44   : > { %s2052_s26 = scalar_lea.vmem %s2224_s0, %s1475_s20  ;;  %v463_v23 = vld [vmem:[%s2228_s4 + $0x18] sm:$0xff]  ;;  %v464_v24 = vld [vmem:[%s2228_s4 + $0x20] sm:$0xff]  ;;  %v465_v25 = vld [vmem:[%s2228_s4 + $0x28] sm:$0xff]  ;;  %s2163_s21 = scalar_lea.vmem [#allocation8], %s1439_s18 }
  0x45   : > { %v355_v1 = vld [vmem:[%s2052_s26 + $0x38] sm:$0xff]  ;;  %v354_v2 = vld [vmem:[%s2052_s26 + $0x30] sm:$0xff]  ;;  %v353_v3 = vld [vmem:[%s2052_s26 + $0x28] sm:$0xff]  ;;  %s1336_s23 = sshll.u32 %s2163_s21, 4  ;;  %s2179_s17 = scalar_lea.hbm %s2232_s8, %s1476_s19  ;;  %s2173_s23 = int_to_ptr.vmem [resolvable:$true] %s1336_s23 }
  0x46   : > { %1543 = vmatprep.subr.mxu0 %v355_v1  ;;  %1562 = vmatprep.subr.mxu1 %v355_v1  ;;  %v352_v4 = vld [vmem:[%s2052_s26 + $0x20] sm:$0xff]  ;;  %v351_v5 = vld [vmem:[%s2052_s26 + $0x18] sm:$0xff]  ;;  %v350_v6 = vld [vmem:[%s2052_s26 + $0x10] sm:$0xff]  ;;  %s2184_s20 = scalar_lea.sflag [#allocation4], %s340_s13  ;;  %s1826_s9 = scalar_lea.vmem %s2173_s23, 1024 }
  0x47   : > { %1544 = vmatpush3.msra.mxu0 %v355_v1  ;;  %1563 = vmatpush3.msra.mxu1 %v355_v1  ;;  %v349_v7 = vld [vmem:[%s2052_s26 + $0x8] sm:$0xff]  ;;  %v348_v8 = vld [vmem:[%s2052_s26] sm:$0xff]  ;;  %v467_v26 = vld [vmem:[%s2228_s4 + $0x38] sm:$0xff]  ;;  %p1827_p10 = scmp.ne.s32.totalorder %s2173_s23, %s1826_s9  ;;  %p2243_p12 = scmp.ne.s32.totalorder %s2235_s15, 0 }
  0x48   : > { %1545 = vmatprep.subr.mxu0 %v354_v2  ;;  %1564 = vmatprep.subr.mxu1 %v354_v2  ;;  %v1138_v27 = vld [vmem:[%s2231_s7 + $0x8] sm:$0xff]  ;;  %v1140_v28 = vld [vmem:[%s2231_s7 + $0x18] sm:$0xff]  ;;  %v650_v31 = vld [vmem:[#allocation5] sm:$0xff]  ;;  %s1902_s22 = smov [#allocation8]  }
  0x49   : > { %1546 = vmatpush3.msra.mxu0 %v354_v2  ;;  %1565 = vmatpush3.msra.mxu1 %v354_v2  ;;  %v1142_v29 = vld [vmem:[%s2231_s7 + $0x28] sm:$0xff]  ;;  %v1144_v30 = vld [vmem:[%s2231_s7 + $0x38] sm:$0xff]  ;;  %v466_v1 = vld [vmem:[%s2228_s4 + $0x30] sm:$0xff]  ;;  %p1828_p2 = pnand %p1827_p10, %p2243_p12  ;;  %s1830_s24 = sshll.u32 %s1902_s22, 4  ;;  %s1831_s24 = int_to_ptr.vmem [resolvable:$false] %s1830_s24 }
  0x4a   : > { %1547 = vmatprep.subr.mxu0 %v353_v3  ;;  %1566 = vmatprep.subr.mxu1 %v353_v3  ;;  %v461_v32 = vld [vmem:[%s2228_s4 + $0x8] sm:$0xff]  ;;  %v1137_v2 = vld [vmem:[%s2231_s7] sm:$0xff]  ;;  %s1832_s26 = scalar_lea.vmem %s1831_s24, 2048  ;;  %p1833_p7 = scmp.lt.s32.totalorder %s2173_s23, %s1831_s24 }
  0x4b   : > { %1548 = vmatpush3.msra.mxu0 %v353_v3  ;;  %1567 = vmatpush3.msra.mxu1 %v353_v3  ;;  %v651_v54 = vld [vmem:[#allocation5 + $0x8] sm:$0xff]  ;;  %v1139_v3 = vld [vmem:[%s2231_s7 + $0x10] sm:$0xff]  ;;  %p1829_p4 = pneg %p1828_p2  ;;  %p1834_p8 = scmp.lt.s32.totalorder %s1832_s26, %s1826_s9 }
  0x4c   : > { %1549 = vmatprep.subr.mxu0 %v352_v4  ;;  %1568 = vmatprep.subr.mxu1 %v352_v4 }
  0x4d   : > { %1550 = vmatpush3.msra.mxu0 %v352_v4  ;;  %1569 = vmatpush3.msra.mxu1 %v352_v4  ;;  %v1141_v4 = vld [vmem:[%s2231_s7 + $0x20] sm:$0xff]  ;;  %p1835_p11 = por %p1834_p8, %p1833_p7 }
  0x4e   : > { %1551 = vmatprep.subr.mxu0 %v351_v5  ;;  %1570 = vmatprep.subr.mxu1 %v351_v5 }
  0x4f   : > { %1552 = vmatpush3.msra.mxu0 %v351_v5  ;;  %1571 = vmatpush3.msra.mxu1 %v351_v5  ;;  %v1143_v5 = vld [vmem:[%s2231_s7 + $0x30] sm:$0xff]  ;;  %p1836_p0 = pnand %p1835_p11, %p1829_p4 }
  0x50   : > { %1553 = vmatprep.subr.mxu0 %v350_v6  ;;  %1572 = vmatprep.subr.mxu1 %v350_v6 }
  0x51   : > { %1554 = vmatpush3.msra.mxu0 %v350_v6  ;;  %1573 = vmatpush3.msra.mxu1 %v350_v6 }
  0x52   : > { %1555 = vmatprep.subr.mxu0 %v349_v7  ;;  %1574 = vmatprep.subr.mxu1 %v349_v7 }
  0x53   : > { %1556 = vmatpush3.msra.mxu0 %v349_v7  ;;  %1575 = vmatpush3.msra.mxu1 %v349_v7 }
  0x54   : > { %1557 = vmatprep.subr.mxu0 %v348_v8  ;;  %1576 = vmatprep.subr.mxu1 %v348_v8 }
  0x55   : > { %1558 = vmatpush3.msra.mxu0 %v348_v8  ;;  %1577 = vmatpush3.msra.mxu1 %v348_v8 }
  0x56   : > { %1560 = vmatmul.mubr.msk.f32.vlgmr.msra.gmra.mxu0 %vm370_vm0, %v357_v11  ;;  %1579 = vmatmul.mubr.msk.f32.vlgmr.msra.gmra.mxu1 %vm370_vm0, %v453_v12 }
  0x57   : > { %1581 = vmatprep.mubr.msk.f32.mxu1 %vm370_vm0, %v454_v13  ;;  %367 = vperm.xlu0 %1732, %v359_v17  }
  0x58   : > { %1594 = vmatprep.mubr.msk.f32.mxu0 %vm652_vm1, %v650_v31  ;;  %475 = vperm.xlu1 %1733, %v461_v32  }
  0x5a   : > { %1582 = vmatmul.mubr.msk.f32.gmra.mxu1 %vm370_vm0, %v455_v15 }
  0x5b   : > { %1584 = vmatprep.mubr.msk.f32.mxu1 %vm370_vm0, %v456_v16  ;;  %470 = vperm.xlu0 %1732, %v460_v20  }
  0x5e   : > { %1585 = vmatmul.mubr.msk.f32.gmra.mxu1 %vm370_vm0, %v457_v18 }
  0x5f   : > { %1587 = vmatprep.mubr.msk.f32.mxu1 %vm370_vm0, %v458_v19  ;;  %480 = vperm.xlu0 %1732, %v462_v22  }
  0x62   : > { %1588 = vmatmul.mubr.msk.f32.gmra.mxu1 %vm370_vm0, %v459_v21 }
  0x63   : > { %485 = vperm.xlu0 %1732, %v463_v23  }
  0x67   : > { %490 = vperm.xlu0 %1732, %v464_v24  }
  0x6b   : > { %495 = vperm.xlu0 %1732, %v465_v25  }
  0x6f   : > { %505 = vperm.xlu0 %1732, %v467_v26  }
  0x73   : > { %1152 = vperm.xlu0 %1732, %v1138_v27  }
  0x77   : > { %1162 = vperm.xlu0 %1732, %v1140_v28  }
  0x7b   : > { %1172 = vperm.xlu0 %1732, %v1142_v29  }
  0x7f   : > { %1182 = vperm.xlu0 %1732, %v1144_v30  }
  0xbd   : > { %v363_v33 = vpop.permute.xlu0 %362 }
  0xd2   : > { %v368_v34 = vpop.permute.xlu0 %367 }
  0xd3   : > { %v476_v10 = vpop.permute.xlu1 %475 }
  0xd6   : > { %v471_v55 = vpop.permute.xlu0 %470 }
  0xda   : > { %v481_v20 = vpop.permute.xlu0 %480 }
  0xde   : > { %v486_v24 = vpop.permute.xlu0 %485 }
  0xe2   : > { %v491_v31 = vpop.permute.xlu0 %490 }
 0x116   : > { %v1561_v35 = vpop.f32.mrf.mxu0  ;;  %v2118_v49 = vpop.f32.mrf.mxu1 }
 0x117   : > { %v449_v36 = vadd.f32 %v1561_v35, %v368_v34 }
 0x118   : > { %v443_v37 = vpop.f32.mrf.mxu0  ;;  %v598_v53 = vpop.f32.mrf.mxu1 }
 0x119   : > { %v444_v38 = vadd.f32 %v443_v37, %v363_v33  ;;  %v638_v39 = vmul.f32 %v449_v36, %v449_v36  ;;  %v599_v56 = vadd.f32 %v598_v53, %v471_v55  ;;  %v604_v33 = vadd.f32 %v2118_v49, %v476_v10 }
 0x11a   : > { %v1583_v21 = vpop.f32.mrf.mxu1 }
 0x11b   : > { %v637_v40 = vmul.f32 %v444_v38, %v444_v38 }
 0x11c   : > { %v608_v23 = vpop.f32.mrf.mxu1 }
 0x11d   : > { %v639_v41 = vadd.f32 %v638_v39, %v637_v40  ;;  %v609_v34 = vadd.f32 %v608_v23, %v481_v20 }
 0x11e   : > { %v1586_v27 = vpop.f32.mrf.mxu1 }
 0x11f   : > { %v640_v42 = vrot.slane %v639_v41, 4 }
 0x120   : > { %v618_v32 = vpop.f32.mrf.mxu1 }
 0x121   : > { %v641_v43 = vadd.f32 %v640_v42, %v639_v41  ;;  %v619_v39 = vadd.f32 %v618_v32, %v491_v31 }
 0x122   : > { %v1589_v37 = vpop.f32.mrf.mxu1 }
 0x123   : > { %v642_v44 = vrot.slane %v641_v43, 2 }
 0x124   : > { %v628_v40 = vpop.f32.mrf.mxu1 }
 0x125   : > { %v643_v45 = vadd.f32 %v642_v44, %v641_v43 }
 0x127   : > { %v644_v46 = vrot.slane %v643_v45, 1 }
 0x129   : > { %v645_v47 = vadd.f32 %v644_v46, %v643_v45 }
 0x12b   : > { %v646_v48 = vmax.f32 %v645_v47, 1e-24 }
 0x12d   : > { %1734 = vrsqrt.f32 %v646_v48 }
 0x13a   : > { %v1735_v50 = vpop.eup %1734 }
 0x13b   : > { %v649_v51 = vmul.f32 %v1735_v50, %v449_v36  ;;  %v648_v52 = vmul.f32 %v1735_v50, %v444_v38  ;;  %v614_v36 = vadd.f32 %v1583_v21, %v486_v24  ;;  %v496_v38 = vpop.permute.xlu0 %495 }
 0x13c   : > { %v624_v43 = vadd.f32 %v1586_v27, %v496_v38 }
 0x13d   : > { %1590 = vmatprep.subr.mxu0 %v649_v51 }
 0x13e   : > { %1591 = vmatpush3.msra.mxu0 %v649_v51 }
 0x13f   : > { %1592 = vmatprep.subr.mxu0 %v648_v52  ;;  %v506_v46 = vpop.permute.xlu0 %505 }
 0x140   : > { %1593 = vmatpush3.msra.mxu0 %v648_v52  ;;  %v634_v47 = vadd.f32 %v1589_v37, %v506_v46 }
 0x141   : > { %1595 = vmatmul.mubr.msk.f32.vlgmr.msra.gmra.mxu0 %vm652_vm1, %v651_v54 }
 0x142   : > { %1599 = vmatprep.mubr.f32.mxu0 %v599_v56  ;;  %v1129_v56 = vld [vmem:[#allocation7] sm:$0xff] }
 0x143   : > { %1645 = vmatprep.mubr.msk.f32.mxu1 %vm370_vm0, %v1129_v56 }
 0x201   : > { %v1596_v57 = vpop.f32.mrf.mxu0 }
 0x202   : > { %v735_v58 = vmul.f32 14.0, %v1596_v57 }
 0x203   : > { %v725_v59 = vpop.f32.mrf.mxu0 }
 0x204   : > { %v738_v60 = vmul.f32 1.442695, %v735_v58  ;;  %v734_v61 = vmul.f32 14.0, %v725_v59 }
 0x206   : > { %1736 = vpow2.f32 %v738_v60  ;;  %v736_v62 = vmul.f32 1.442695, %v734_v61 }
 0x208   : > { %1738 = vpow2.f32 %v736_v62 }
 0x213   : > { %v2121_v63 = vpop.eup %1736 }
 0x214   : > { %758 = vadd.xlane.f32.xlu1 %v2121_v63  ;;  %v746_v9 = vrot.slane %v2121_v63, 4 }
 0x215   : > { %v1739_v0 = vpop.eup %1738 }
 0x216   : > { %v740_v6 = vrot.slane %v1739_v0, 4  ;;  %v747_v12 = vadd.f32 %v2121_v63, %v746_v9 }
 0x218   : > { %756 = vadd.xlane.f32.xlu1 %v1739_v0  ;;  %v741_v7 = vadd.f32 %v1739_v0, %v740_v6  ;;  %v748_v15 = vrot.slane %v747_v12, 2  ;;  %v1135_v6 = vld [vmem:[#allocation7 + $0x30] sm:$0xff] }
 0x21a   : > { %v742_v8 = vrot.slane %v741_v7, 2  ;;  %v749_v18 = vadd.f32 %v748_v15, %v747_v12 }
 0x21c   : > { %v743_v11 = vadd.f32 %v742_v8, %v741_v7  ;;  %v750_v19 = vrot.slane %v749_v18, 1  ;;  %v1136_v7 = vld [vmem:[#allocation7 + $0x38] sm:$0xff]  ;;  %v1153_v8 = vpop.permute.xlu0 %1152 }
 0x21e   : > { %v744_v14 = vrot.slane %v743_v11, 1  ;;  %v751_v22 = vadd.f32 %v750_v19, %v749_v18 }
 0x220   : > { %v745_v17 = vadd.f32 %v744_v14, %v743_v11  ;;  %v1163_v10 = vpop.permute.xlu0 %1162 }
 0x224   : > { %v1173_v18 = vpop.permute.xlu0 %1172 }
 0x229   : > { %500 = vperm.xlu1 %1733, %v466_v1   ;;  %v1130_v1 = vld [vmem:[#allocation7 + $0x8] sm:$0xff] }
 0x22d   : > { %1147 = vperm.xlu1 %1733, %v1137_v2   ;;  %v1131_v2 = vld [vmem:[#allocation7 + $0x10] sm:$0xff] }
 0x231   : > { %1157 = vperm.xlu1 %1733, %v1139_v3   ;;  %v1132_v3 = vld [vmem:[#allocation7 + $0x18] sm:$0xff] }
 0x235   : > { %1167 = vperm.xlu1 %1733, %v1141_v4   ;;  %v1133_v4 = vld [vmem:[#allocation7 + $0x20] sm:$0xff] }
 0x239   : > { %1177 = vperm.xlu1 %1733, %v1143_v5   ;;  %v1134_v5 = vld [vmem:[#allocation7 + $0x28] sm:$0xff] }
 0x29d   : > { %v759_v13 = vpop.xlane.xlu1 %758 }
 0x29e   : > { %1740 = vrcp.f32 %v759_v13 }
 0x2a1   : > { %v757_v16 = vpop.xlane.xlu1 %756 }
 0x2a2   : > { %1742 = vrcp.f32 %v757_v16 }
 0x2a3   : > { %1744 = vrcp.f32 %v745_v17 }
 0x2a4   : > { %1746 = vrcp.f32 %v751_v22 }
 0x2a5   : > { %v501_v41 = vpop.permute.xlu1 %500 }
 0x2a6   : > { %v629_v44 = vadd.f32 %v628_v40, %v501_v41 }
 0x2a9   : > { %v1148_v9 = vpop.permute.xlu1 %1147 }
 0x2ab   : > { %v1741_v25 = vpop.eup %1740 }
 0x2ac   : > { %v763_v29 = vmul.f32 %v1741_v25, %v2121_v63 }
 0x2ad   : > { %v1158_v13 = vpop.permute.xlu1 %1157 }
 0x2af   : > { %v1743_v26 = vpop.eup %1742 }
 0x2b0   : > { %v762_v28 = vmul.f32 %v1743_v26, %v1739_v0  ;;  %v1745_v30 = vpop.eup %1744  ;;  %v1183_v26 = vpop.permute.xlu0 %1182 }
 0x2b1   : > { %v754_v35 = vmul.f32 %v1745_v30, %v1739_v0  ;;  %v1747_v42 = vpop.eup %1746  ;;  %v1168_v21 = vpop.permute.xlu1 %1167 }
 0x2b2   : > { %1597 = vmatprep.subr.mxu0 %v762_v28  ;;  %v755_v45 = vmul.f32 %v1747_v42, %v2121_v63 }
 0x2b3   : > { %1598 = vmatpush3.xpose.msra.mxu0 %v762_v28 }
 0x2b4   : > { %1605 = vmatprep.subr.mxu0 %v763_v29 }
 0x2b6   : > { %1600 = vmatmul.mubr.f32.vlgmr.msra.gmra.mxu0 %v604_v33 }
 0x2b7   : > { %1602 = vmatprep.mubr.f32.mxu0 %v609_v34  ;;  %1606 = vmatpush3.xpose.msra.mxu0 %v763_v29  ;;  %v1178_v29 = vpop.permute.xlu1 %1177 }
 0x2b8   : > { %1613 = vmatprep.subr.mxu0 %v754_v35 }
 0x2ba   : > { %1603 = vmatmul.mubr.f32.gmra.mxu0 %v614_v36 }
 0x2bb   : > { %1607 = vmatprep.mubr.f32.mxu0 %v619_v39 }
 0x2be   : > { %1608 = vmatmul.mubr.f32.vlgmr.msra.gmra.mxu0 %v624_v43 }
 0x2bf   : > { %1614 = vmatpush3.msra.mxu0 %v754_v35  ;;  %1610 = vmatprep.mubr.f32.mxu0 %v629_v44 }
 0x2c0   : > { %1621 = vmatprep.subr.mxu0 %v755_v45 }
 0x2c2   : > { %1611 = vmatmul.mubr.f32.gmra.mxu0 %v634_v47 }
 0x376   : > { %v1601_v48 = vpop.f32.mrf.mxu0 }
 0x378   : > { %v830_v49 = vpop.f32.mrf.mxu0 }
 0x379   : > { %1615 = vmatprep.mubr.msk.f32.mxu0 %vm934_vm2, %v830_v49 }
 0x37a   : > { %v1604_v50 = vpop.f32.mrf.mxu0  ;;  %1616 = vmatmul.mubr.msk.f32.vlgmr.msra.gmra.mxu0 %vm934_vm2, %v1601_v48 }
 0x37b   : > { %1622 = vmatpush3.msra.mxu0 %v755_v45 }
 0x37c   : > { %v840_v51 = vpop.f32.mrf.mxu0 }
 0x37d   : > { %1618 = vmatprep.mubr.msk.f32.mxu0 %vm934_vm2, %v840_v51 }
 0x37e   : > { %v1609_v52 = vpop.f32.mrf.mxu0  ;;  %1619 = vmatmul.mubr.msk.f32.gmra.mxu0 %vm934_vm2, %v1604_v50 }
 0x380   : > { %v915_v53 = vpop.f32.mrf.mxu0 }
 0x381   : > { %1623 = vmatprep.mubr.msk.f32.mxu0 %vm934_vm2, %v915_v53 }
 0x382   : > { %v1612_v54 = vpop.f32.mrf.mxu0  ;;  %1624 = vmatmul.mubr.msk.f32.vlgmr.msra.gmra.mxu0 %vm934_vm2, %v1609_v52 }
 0x384   : > { %v925_v55 = vpop.f32.mrf.mxu0 }
 0x385   : > { %1626 = vmatprep.mubr.msk.f32.mxu0 %vm934_vm2, %v925_v55 }
 0x386   : > { %1627 = vmatmul.mubr.msk.f32.gmra.mxu0 %vm934_vm2, %v1612_v54 }
 0x43a   : > { %v1617_v57 = vpop.f32.mrf.mxu0 }
 0x43c   : > { %v1013_v58 = vpop.f32.mrf.mxu0 }
 0x43e   : > { %v1620_v59 = vpop.f32.mrf.mxu0 }
 0x440   : > { %v1023_v60 = vpop.f32.mrf.mxu0 }
 0x442   : > { %v1625_v61 = vpop.f32.mrf.mxu0 }
 0x444   : > { %v1110_v62 = vpop.f32.mrf.mxu0 }
 0x446   : > { %v1628_v63 = vpop.f32.mrf.mxu0 }
 0x447   : > { %1629 = vmatprep.subr.mxu1 %v1628_v63 }
 0x448   : > { %v1120_v0 = vpop.f32.mrf.mxu0  ;;  %1630 = vmatpush3.msra.mxu1 %v1628_v63 }
 0x449   : > { %1631 = vmatprep.subr.mxu1 %v1120_v0 }
 0x44a   : > { %1632 = vmatpush3.msra.mxu1 %v1120_v0 }
 0x44b   : > { %1633 = vmatprep.subr.mxu1 %v1625_v61 }
 0x44c   : > { %1634 = vmatpush3.msra.mxu1 %v1625_v61 }
 0x44d   : > { %1635 = vmatprep.subr.mxu1 %v1110_v62 }
 0x44e   : > { %1636 = vmatpush3.msra.mxu1 %v1110_v62 }
 0x44f   : > { %1637 = vmatprep.subr.mxu1 %v1620_v59 }
 0x450   : > { %1638 = vmatpush3.msra.mxu1 %v1620_v59 }
 0x451   : > { %1639 = vmatprep.subr.mxu1 %v1023_v60 }
 0x452   : > { %1640 = vmatpush3.msra.mxu1 %v1023_v60 }
 0x453   : > { %1641 = vmatprep.subr.mxu1 %v1617_v57 }
 0x454   : > { %1642 = vmatpush3.msra.mxu1 %v1617_v57 }
 0x455   : > { %1643 = vmatprep.subr.mxu1 %v1013_v58 }
 0x456   : > { %1644 = vmatpush3.msra.mxu1 %v1013_v58 }
 0x457   : > { %1646 = vmatmul.mubr.msk.f32.vlgmr.msra.gmra.mxu1 %vm370_vm0, %v1130_v1 }
 0x458   : > { %1648 = vmatprep.mubr.msk.f32.mxu1 %vm370_vm0, %v1131_v2 }
 0x45b   : > { %1649 = vmatmul.mubr.msk.f32.gmra.mxu1 %vm370_vm0, %v1132_v3 }
 0x45c   : > { %1651 = vmatprep.mubr.msk.f32.mxu1 %vm370_vm0, %v1133_v4 }
 0x45f   : > { %1652 = vmatmul.mubr.msk.f32.gmra.mxu1 %vm370_vm0, %v1134_v5 }
 0x460   : > { %1654 = vmatprep.mubr.msk.f32.mxu1 %vm370_vm0, %v1135_v6 }
 0x463   : > { %1655 = vmatmul.mubr.msk.f32.gmra.mxu1 %vm370_vm0, %v1136_v7 }
 0x517   : > { %v1647_v11 = vpop.f32.mrf.mxu1 }
 0x518   : > { %v1281_v12 = vadd.f32 %v1647_v11, %v1153_v8 }
 0x519   : > { %v1275_v14 = vpop.f32.mrf.mxu1 }
 0x51a   : > { %1315 = vst [vmem:[%s2163_s21 + $0x8] sm:$0xff] %v1281_v12  ;;  %v1276_v15 = vadd.f32 %v1275_v14, %v1148_v9 }
 0x51b   : > { %v1650_v16 = vpop.f32.mrf.mxu1 }
 0x51c   : > { %1314 = vst [vmem:[%s2163_s21] sm:$0xff] %v1276_v15  ;;  %v1291_v17 = vadd.f32 %v1650_v16, %v1163_v10 }
 0x51d   : > { %v1285_v19 = vpop.f32.mrf.mxu1 }
 0x51e   : > { %1317 = vst [vmem:[%s2163_s21 + $0x18] sm:$0xff] %v1291_v17  ;;  %v1286_v20 = vadd.f32 %v1285_v19, %v1158_v13 }
 0x51f   : > { %v1653_v22 = vpop.f32.mrf.mxu1 }
 0x520   : > { %1316 = vst [vmem:[%s2163_s21 + $0x10] sm:$0xff] %v1286_v20  ;;  %v1301_v23 = vadd.f32 %v1653_v22, %v1173_v18 }
 0x521   : > { %v1295_v24 = vpop.f32.mrf.mxu1 }
 0x522   : > { %1319 = vst [vmem:[%s2163_s21 + $0x28] sm:$0xff] %v1301_v23  ;;  %v1296_v25 = vadd.f32 %v1295_v24, %v1168_v21 }
 0x523   : > { %v1656_v27 = vpop.f32.mrf.mxu1 }
 0x524   : > { %1318 = vst [vmem:[%s2163_s21 + $0x20] sm:$0xff] %v1296_v25  ;;  %v1311_v28 = vadd.f32 %v1656_v27, %v1183_v26 }
 0x525   : > { %v1305_v30 = vpop.f32.mrf.mxu1 }
 0x526   : > { %1321 = vst [vmem:[%s2163_s21 + $0x38] sm:$0xff] %v1311_v28  ;;  %v1306_v31 = vadd.f32 %v1305_v30, %v1178_v29 }
 0x528   : > { %1320 = vst [vmem:[%s2163_s21 + $0x30] sm:$0xff] %v1306_v31 }
 0x529   : > { %1839 = shalt.err (!%p1836_p0)
}
 0x52a   : > { %s1840_s10 = scalar_lea.hbm %s2179_s17, 1024  ;;  %s1844_s21 = scalar_lea.hbm %s2232_s8, 2048 }
 0x52b   : > { %p1841_p6 = scmp.ne.s32.totalorder %s2179_s17, %s1840_s10  ;;  %p1845_p1 = scmp.lt.s32.totalorder %s2179_s17, %s2232_s8 }
 0x52c   : > { %p1846_p5 = scmp.lt.s32.totalorder %s1844_s21, %s1840_s10 }
 0x52d   : > { %p1842_p9 = pnand %p1841_p6, %p2243_p12 }
 0x52e   : > { %p1847_p3 = por %p1846_p5, %p1845_p1 }
 0x52f   : > { %p1843_p13 = pneg %p1842_p9 }
 0x531   : > { %p1848_p10 = pnand %p1847_p3, %p1843_p13 }
 0x533   : > { %1851 = shalt.err (!%p1848_p10)
}
 0x534   : > { %s1903_s12 = smov 128   ;;  %s1904_s9 = smov 8  }
 0x535   : > { %1669 = dma.vmem_to_hbm [thread:$0]  (%p2243_p12), %s2173_s23, 1024, %s2179_s17, %s2184_s20, %s1903_s12, %s1903_s12, %s1904_s9  }
 0x536 PF: > { %p1691_p2 = scmp.ge.s32.totalorder %s1894_s30, 2  ;;  %s1351_s22 = sand.u32 1, %s1882_s27  }
 0x537   : > { %p2244_p4 = scmp.ne.s32.totalorder %s2236_s16, 0  ;;  %s1352_s24 = scalar_lea.sflag [#allocation4], %s1351_s22 }
 0x539   : > { %p1682_p7 = pnand %p1691_p2, %p2244_p4 }
 0x53b   : > { %p1683_p8 = pneg %p1682_p7 }
 0x53d   : > { %1877 = dma.done.wait (%p1683_p8), %s1352_s24, 1024  }
 0x53e   : > { %1879 = vsyncadd (%p1683_p8), %s1352_s24, 4294966272  ;;  %p20_p11 = scmp.ge.s32.totalorder %s1975_s11, 4   ;;  %s2245_s27 = smov %s1886_s28 }
 0x53f   : > { %s2246_s28 = smov %s1890_s29  ;;  %s2247_s29 = smov %s1986_s14 }
 0x540   : > { %s2248_s30 = smov %s1975_s11  ;;  %22 = sbr.rel (!%p20_p11) target bundleno = 5 (0x5), region = 100 }
 0x545   :  { %1357 = vsyncpa [#allocation3], 1 }
 0x546   :  { %1359 = vsyncpa [#allocation3 + $0x1], 1 }
 0x547   :  { %1360 = vsyncpa [#allocation6], 1 }
 0x548   :  { %1361 = vsyncpa [#allocation4], 1 }
 0x549   :  { %1363 = vsyncpa [#allocation4 + $0x1], 1 }

</bundles_post_ra>
